<compile_context>
chip_gen: v5e
topology: v5e:2x2
jax: 0.10.0
libtpu: 0.0.40
codegen_flags: <defaults>
</compile_context>

<pallas_src>
import functools

import jax
import jax.numpy as jnp
from jax import lax
from jax.experimental import pallas as pl
from jax.experimental.pallas import tpu as pltpu


def _round_up(x, m):
    return ((x + m - 1) // m) * m


def _cdiv(a, b):
    return -(-a // b)


# ---------------------------------------------------------------------------
# Pass 1: squeeze — per-(b, c) spatial mean, tiled over (B*C, H*W).
#   acc_ref (tile_bc, 128) f32 scratch accumulates 128-lane partial sums with
#   VPU adds; the cross-lane reduce + *1/(H*W) happens once per BC tile.
# ---------------------------------------------------------------------------
def _squeeze_kernel(x_ref, mean_ref, acc_ref, *, hw, tile_hw, n_hw_steps, inv_hw):
    k = pl.program_id(1)

    @pl.when(k == 0)
    def _():
        acc_ref[...] = jnp.zeros_like(acc_ref)

    n_chunks = tile_hw // 128
    lane = lax.broadcasted_iota(jnp.int32, acc_ref.shape, 1)  # (tile_bc, 128)
    base = k * tile_hw
    for j in range(n_chunks):
        chunk = x_ref[:, j * 128:(j + 1) * 128].astype(jnp.float32)
        # Only chunks that can run past `hw` on the LAST HW step ever need a
        # mask (static check); everything else is a pure vld + vadd.
        if (n_hw_steps - 1) * tile_hw + (j + 1) * 128 > hw:
            chunk = jnp.where(lane < hw - base - j * 128, chunk, 0.0)
        acc_ref[...] += chunk

    @pl.when(k == n_hw_steps - 1)
    def _():
        # Single 128 -> 1 cross-lane reduce per BC tile; fold in 1/(H*W).
        mean_ref[...] = jnp.sum(acc_ref[...], axis=-1, keepdims=True) * inv_hw


# ---------------------------------------------------------------------------
# Pass 2: excitation — tiny FC -> ReLU -> FC -> sigmoid, residual folded in
# as "+ 1".  Runs once on the pooled (B, C) means; weights stay in PyTorch
# nn.Linear layout (no wrapper transpose).
# ---------------------------------------------------------------------------
def _excite_kernel(pooled_ref, w1_ref, w2_ref, scale_ref):
    y = pooled_ref[...]                                                # (B, C) means
    h = lax.dot_general(y, w1_ref[...], (((1,), (1,)), ((), ())),
                        preferred_element_type=jnp.float32)            # y @ w1.T
    h = jnp.maximum(h, 0.0)
    s = lax.dot_general(h, w2_ref[...], (((1,), (1,)), ((), ())),
                        preferred_element_type=jnp.float32)            # h @ w2.T
    scale_ref[...] = jax.nn.sigmoid(s) + 1.0                           # x*s + x == x*(s+1)


# ---------------------------------------------------------------------------
# Pass 3: scale + residual — out = x * (s + 1), tiled over (B*C, H*W).
# ---------------------------------------------------------------------------
def _scale_kernel(x_ref, s_ref, o_ref):
    o_ref[...] = (x_ref[...] * s_ref[...]).astype(o_ref.dtype)


def se_layer_only(x, w1, w2, *, target_block_bytes=4 * 1024 * 1024,
                  max_tile_hw=8192, donate_x=False):
    """x: (B, C, H, W); w1: (C//r, C); w2: (C, C//r)  (PyTorch nn.Linear layouts)."""
    B, C, H, W = x.shape
    bc, hw = B * C, H * W
    itemsize = jnp.dtype(x.dtype).itemsize

    # ---- tile selection: near-equal 128-multiple HW tiles, ~target-size blocks.
    hw128 = _round_up(hw, 128)
    cap_hw = min(hw128, max(128, _round_up(max_tile_hw, 128)))
    n_hw = _cdiv(hw128, cap_hw)
    tile_hw = _round_up(_cdiv(hw128, n_hw), 128)

    rows = max(8, (target_block_bytes // (tile_hw * itemsize)) // 8 * 8)
    tile_bc = min(_round_up(bc, 8), rows)
    # Keep >= 2 BC blocks when possible so the "parallel" axis shards across
    # v7x's two TensorCores (pass 1 has only this axis parallel).
    if bc >= 16 and _cdiv(bc, tile_bc) < 2:
        tile_bc = _round_up(_cdiv(bc, 2), 8)

    grid = (_cdiv(bc, tile_bc), _cdiv(hw, tile_hw))
    block_bytes = tile_bc * tile_hw * itemsize

    x2 = x.reshape(bc, hw)  # contiguous reshape: bitcast, no HBM copy

    # ---- Pass 1: per-row spatial means (reduction axis last, scratch accumulator).
    vmem1 = int(max(2 * block_bytes + tile_bc * 128 * 4 + 2 * tile_bc * 4 + (2 << 20),
                    32 * 1024 * 1024))
    pooled = pl.pallas_call(
        functools.partial(_squeeze_kernel, hw=hw, tile_hw=tile_hw,
                          n_hw_steps=grid[1], inv_hw=1.0 / hw),
        out_shape=jax.ShapeDtypeStruct((bc, 1), jnp.float32),
        grid_spec=pltpu.PrefetchScalarGridSpec(
            num_scalar_prefetch=0,
            grid=grid,
            in_specs=[pl.BlockSpec((tile_bc, tile_hw), lambda i, k: (i, k))],
            out_specs=pl.BlockSpec((tile_bc, 1), lambda i, k: (i, 0)),
            scratch_shapes=[pltpu.VMEM((tile_bc, 128), jnp.float32)],
        ),
        compiler_params=pltpu.CompilerParams(
            dimension_semantics=("parallel", "arbitrary"),
            vmem_limit_bytes=vmem1),
    )(x2)

    # ---- Pass 2: tiny excitation MLP, single un-tiled invocation.
    scale = pl.pallas_call(
        _excite_kernel,
        out_shape=jax.ShapeDtypeStruct((B, C), jnp.float32),
        in_specs=[pl.BlockSpec(memory_space=pltpu.MemorySpace.VMEM)] * 3,
        out_specs=pl.BlockSpec(memory_space=pltpu.MemorySpace.VMEM),
    )(pooled.reshape(B, C), w1, w2)

    # ---- Pass 3: out = x * (s + 1), both grid axes parallel, no padding.
    vmem3 = int(max(4 * block_bytes + 2 * tile_bc * 4 + (2 << 20),
                    32 * 1024 * 1024))
    out2 = pl.pallas_call(
        _scale_kernel,
        out_shape=jax.ShapeDtypeStruct((bc, hw), x.dtype),
        grid_spec=pltpu.PrefetchScalarGridSpec(
            num_scalar_prefetch=0,
            grid=grid,
            in_specs=[pl.BlockSpec((tile_bc, tile_hw), lambda i, j: (i, j)),
                      pl.BlockSpec((tile_bc, 1), lambda i, j: (i, 0))],
            out_specs=pl.BlockSpec((tile_bc, tile_hw), lambda i, j: (i, j)),
        ),
        compiler_params=pltpu.CompilerParams(
            dimension_semantics=("parallel", "parallel"),
            vmem_limit_bytes=vmem3),
        # Alias x into the output only when the caller can donate its buffer;
        # otherwise XLA would insert a defensive copy.
        input_output_aliases=({0: 0} if donate_x else {}),
    )(x2, scale.reshape(bc, 1))

    return out2.reshape(B, C, H, W)


def _reference(x, w1, w2):
    y = jnp.mean(x, axis=(2, 3))                 # (B, C)
    h = jnp.maximum(y @ w1.T, 0.0)               # (B, C//r)
    s = jax.nn.sigmoid(h @ w2.T)                 # (B, C)
    return x * s[:, :, None, None] + x


if __name__ == "__main__":
    key = jax.random.PRNGKey(0)

    def make_case(k, B, C, H, W, reduction):
        Cr = max(C // reduction, 1)
        kx, k1, k2 = jax.random.split(k, 3)
        x = jax.random.normal(kx, (B, C, H, W), dtype=jnp.float32)
        b1 = 1.0 / (C ** 0.5)
        b2 = 1.0 / (Cr ** 0.5)
        w1 = jax.random.uniform(k1, (Cr, C), jnp.float32, -b1, b1)   # Linear(C -> Cr)
        w2 = jax.random.uniform(k2, (C, Cr), jnp.float32, -b2, b2)   # Linear(Cr -> C)
        return x, w1, w2

    ka, kb = jax.random.split(key)

    # Case 1: lane-aligned spatial (16x16), channel=4, reduction=2.
    x, w1, w2 = make_case(ka, 2, 4, 16, 16, 2)
    out = jax.block_until_ready(se_layer_only(x, w1, w2))
    ref = _reference(x, w1, w2)
    assert out.shape == x.shape
    assert jnp.allclose(out, ref, rtol=1e-5, atol=2e-5), "case 1 mismatch vs reference"

    # Case 2: module defaults (channel=3, reduction=3) with ragged spatial
    # (13x13) and a small HW tile cap so the masked multi-step reduction and
    # partial edge blocks are exercised.
    x, w1, w2 = make_case(kb, 2, 3, 13, 13, 3)
    out = jax.block_until_ready(se_layer_only(x, w1, w2, max_tile_hw=128))
    ref = _reference(x, w1, w2)
    assert jnp.allclose(out, ref, rtol=1e-5, atol=2e-5), "case 2 mismatch vs reference"

    print("KERNEL_OK")
</pallas_src>

<mosaic_0001>
module attributes {stable_mosaic.version = 11 : i64} {
  func.func @_squeeze_kernel(%arg0: i32, %arg1: i32, %arg2: memref<8x256xf32, #tpu.memory_space<vmem>>, %arg3: memref<8x1xf32, #tpu.memory_space<vmem>>, %arg4: memref<8x128xf32, #tpu.memory_space<vmem>>) attributes {dimension_semantics = [#tpu.dimension_semantics<parallel>, #tpu.dimension_semantics<arbitrary>], iteration_bounds = array<i64: 1, 1>, scalar_prefetch = 0 : i64, scratch_operands = 1 : i64, tpu.core_type = #tpu.core_type<tc>, window_params = [{transform_indices = @transform_0, window_bounds = array<i64: 8, 256>}, {transform_indices = @transform_1, window_bounds = array<i64: 8, 1>}]} {
    %c0_i32 = arith.constant 0 : i32
    %0 = arith.cmpi eq, %arg1, %c0_i32 : i32
    %1 = arith.extui %0 : i1 to i32
    %c0_i32_0 = arith.constant 0 : i32
    %2 = arith.cmpi ne, %1, %c0_i32_0 : i32
    scf.if %2 {
      %cst = arith.constant 0.000000e+00 : f32
      %14 = vector.broadcast %cst : f32 to vector<8x128xf32>
      %c0_13 = arith.constant 0 : index
      %c0_14 = arith.constant 0 : index
      %15 = vector.load %arg4[%c0_13, %c0_14] : memref<8x128xf32, #tpu.memory_space<vmem>>, vector<8x128xf32>
      tpu.vector_store %arg4[%c0_13, %c0_14], %14 {strides = array<i32>} : memref<8x128xf32, #tpu.memory_space<vmem>>, vector<8x128xf32>,
    } else {
    }
    %c0 = arith.constant 0 : index
    %c0_1 = arith.constant 0 : index
    %3 = vector.load %arg2[%c0, %c0_1] : memref<8x256xf32, #tpu.memory_space<vmem>>, vector<8x128xf32>
    %c0_2 = arith.constant 0 : index
    %c0_3 = arith.constant 0 : index
    %4 = vector.load %arg4[%c0_2, %c0_3] : memref<8x128xf32, #tpu.memory_space<vmem>>, vector<8x128xf32>
    %5 = arith.addf %4, %3 : vector<8x128xf32>
    %c0_4 = arith.constant 0 : index
    %c0_5 = arith.constant 0 : index
    %6 = vector.load %arg4[%c0_4, %c0_5] : memref<8x128xf32, #tpu.memory_space<vmem>>, vector<8x128xf32>
    tpu.vector_store %arg4[%c0_4, %c0_5], %5 {strides = array<i32>} : memref<8x128xf32, #tpu.memory_space<vmem>>, vector<8x128xf32>,
    %c0_6 = arith.constant 0 : index
    %c128 = arith.constant 128 : index
    %7 = vector.load %arg2[%c0_6, %c128] : memref<8x256xf32, #tpu.memory_space<vmem>>, vector<8x128xf32>
    %c0_7 = arith.constant 0 : index
    %c0_8 = arith.constant 0 : index
    %8 = vector.load %arg4[%c0_7, %c0_8] : memref<8x128xf32, #tpu.memory_space<vmem>>, vector<8x128xf32>
    %9 = arith.addf %8, %7 : vector<8x128xf32>
    %c0_9 = arith.constant 0 : index
    %c0_10 = arith.constant 0 : index
    %10 = vector.load %arg4[%c0_9, %c0_10] : memref<8x128xf32, #tpu.memory_space<vmem>>, vector<8x128xf32>
    tpu.vector_store %arg4[%c0_9, %c0_10], %9 {strides = array<i32>} : memref<8x128xf32, #tpu.memory_space<vmem>>, vector<8x128xf32>,
    %c0_i32_11 = arith.constant 0 : i32
    %11 = arith.cmpi eq, %arg1, %c0_i32_11 : i32
    %12 = arith.extui %11 : i1 to i32
    %c0_i32_12 = arith.constant 0 : i32
    %13 = arith.cmpi ne, %12, %c0_i32_12 : i32
    scf.if %13 {
      %c0_13 = arith.constant 0 : index
      %c0_14 = arith.constant 0 : index
      %14 = vector.load %arg4[%c0_13, %c0_14] : memref<8x128xf32, #tpu.memory_space<vmem>>, vector<8x128xf32>
      %cst = arith.constant dense<0.000000e+00> : vector<8xf32>
      %15 = vector.multi_reduction <add>, %14, %cst [1] : vector<8x128xf32> to vector<8xf32>
      %16 = vector.shape_cast %15 : vector<8xf32> to vector<8x1xf32>
      %cst_15 = arith.constant 3.906250e-03 : f32
      %17 = vector.broadcast %cst_15 : f32 to vector<8x1xf32>
      %18 = arith.mulf %16, %17 : vector<8x1xf32>
      %c0_16 = arith.constant 0 : index
      %c0_17 = arith.constant 0 : index
      %19 = vector.load %arg3[%c0_16, %c0_17] : memref<8x1xf32, #tpu.memory_space<vmem>>, vector<8x1xf32>
      tpu.vector_store %arg3[%c0_16, %c0_17], %18 {strides = array<i32>} : memref<8x1xf32, #tpu.memory_space<vmem>>, vector<8x1xf32>,
    } else {
    }
    return
  }
  func.func @transform_0(%arg0: i32, %arg1: i32) -> (i32, i32) {
    %c0_i32 = arith.constant 0 : i32
    return %arg0, %arg1 : i32, i32
  }
  func.func @transform_1(%arg0: i32, %arg1: i32) -> (i32, i32) {
    %c0_i32 = arith.constant 0 : i32
    %c0_i32_0 = arith.constant 0 : i32
    return %arg0, %c0_i32 : i32, i32
  }
}

</mosaic_0001>

<bundles_post_ra>
// kernel: tpu_custom_call.1
= control target key start
LH: loop header
LB: loop body
LE: loop exit
PB: predicated region body
PF: predicated region fallthrough
CT: control target
= control target key end

     0   :  { %6 = vsyncpa [#allocation4], 0  ;;  %s76_s9 = smov [#allocation3]   ;;  %s93_s0 = inlined_call_operand.hbm [shape: f32[8,256], index: 0, kind: input, shape index: {}]   ;;  %s94_s1 = inlined_call_operand.vmem [shape: f32[8,1], index: 1, kind: output, shape index: {}]  }
   0x1   :  { %s12_s8 = sshll.u32 %s93_s0, 4  ;;  %s14_s10 = sshll.u32 %s76_s9, 4  ;;  %s13_s8 = int_to_ptr.hbm [resolvable:$true] %s12_s8  ;;  %s15_s10 = int_to_ptr.vmem [resolvable:$true] %s14_s10 }
   0x2   :  { %17 = dma.hbm_to_vmem [thread:$0]  %s13_s8, 256, %s15_s10, [#allocation4]  }
   0x3   :  { %74 = dma.done.wait [#allocation4], 256  }
   0x4   :  { %75 = vsyncadd [#allocation4], 4294967040  ;;  %v27_v0 = vld [vmem:[#allocation3] sm:$0xff]  ;;  %v31_v1 = vld [vmem:[#allocation3 + $0x8] sm:$0xff]  ;;  %vm42_vm0 = vcmask 7168  }
   0x5   :  { %v33_v2 = vadd.f32 %v31_v1, %v27_v0 }
   0x7   :  { %39 = vadd.xlane.f32.xlu0 %v33_v2 }
  0x7a   :  { %v40_v3 = vpop.xlane.xlu0 %39 }
  0x7b   :  { %v41_v4 = vmul.f32 0.00390625, %v40_v3 }
  0x7d   :  { %43 = vst.msk [vmem:[%s94_s1] sm:$0xff] %vm42_vm0, %v41_v4 }
  0x7e   :  { %48 = vsyncpa [#allocation4], 1 }

</bundles_post_ra>
